<compile_context>
chip_gen: v7x
topology: tpu7x:2x2x1
jax: 0.10.0
libtpu: 0.0.40
codegen_flags: <defaults>
</compile_context>

<pallas_src>
import functools

import jax
import jax.numpy as jnp
import numpy as np
from jax.experimental import pallas as pl
from jax.experimental.pallas import tpu as pltpu

ALPHA = 0.8
BETA = 0.2
COMP_COL = 1      # predicted[:, 1]
OUT_COL = 9       # predicted[:, 9]
COMP_THRESH = 0.7
OUT_THRESH = 0.85

LANES = 128


def _cdiv(a, b):
    return -(-a // b)


def _round_up(x, m):
    return _cdiv(x, m) * m


def _next_pow2(x):
    p = 1
    while p < x:
        p *= 2
    return p


def _spectral_loss_kernel(thresh_ref, penw_ref, pred_ref, targ_ref, out_ref,
                          acc_ref, *, mse_w):
    """Fused MSE + clamped-column-penalty partial sum over one (tile, 128) block."""
    t = pl.program_id(1)

    # Init the per-split accumulator at the first reduction step.
    @pl.when(t == 0)
    def _():
        acc_ref[...] = jnp.zeros_like(acc_ref)

    p = pred_ref[...]
    # Subtract in the streamed dtype (bf16 stays packed on v6e/v7x),
    # promote to f32 for square + accumulate.
    d = (p - targ_ref[...]).astype(jnp.float32)
    pf = p.astype(jnp.float32)

    # Per-lane threshold / weight vectors are (1, 128) resident inputs
    # (hoisted out of the tile body); they broadcast against the tile.
    pen = jnp.maximum(pf - thresh_ref[...], 0.0)
    val = mse_w * (d * d) + penw_ref[...] * (pen * pen)

    # Single fused reduction per tile: sublane-collapse to a (1, 128) partial.
    acc_ref[0:1, :] = acc_ref[0:1, :] + jnp.sum(val, axis=0, keepdims=True)

    # Flush the per-split partial (rows 1..7 stay zero) on the last step.
    @pl.when(t == pl.num_programs(1) - 1)
    def _():
        out_ref[0] = acc_ref[...]


def spectral_loss(predicted: jax.Array, target: jax.Array,
                  *, tile_rows: int = 1024) -> jax.Array:
    """Pallas-backed SpectralLoss.forward. Returns a scalar float32."""
    assert predicted.shape == target.shape
    assert predicted.ndim == 2
    B, F = predicted.shape
    assert F > OUT_COL, "need at least 10 feature columns"
    assert F <= LANES  # TODO(synk): support F > 128 with a different lane layout.

    # ---- lane-dense layout: pad F up to a power of two that divides 128 ----
    Fp = _next_pow2(F)
    rows_per_lane_row = LANES // Fp

    if Fp != F:
        predicted = jnp.pad(predicted, ((0, 0), (0, Fp - F)))
        target = jnp.pad(target, ((0, 0), (0, Fp - F)))

    # ---- tiling / megacore split geometry -----------------------------------
    rows_real = _cdiv(B, rows_per_lane_row)               # real lane-rows
    tr = min(_round_up(tile_rows, 8), _round_up(rows_real, 8))
    tiles_total = _cdiv(rows_real, tr)
    n_splits = 2 if tiles_total >= 2 else 1                # v7x: one partial per core
    tiles_per_split = _cdiv(tiles_total, n_splits)
    rows_pad = n_splits * tiles_per_split * tr
    b_pad = rows_pad * rows_per_lane_row

    if b_pad != B:
        predicted = jnp.pad(predicted, ((0, b_pad - B), (0, 0)))
        target = jnp.pad(target, ((0, b_pad - B), (0, 0)))

    pred2 = predicted.reshape(rows_pad, LANES)
    targ2 = target.reshape(rows_pad, LANES)

    # ---- host-side per-lane threshold / penalty-weight constants ------------
    lane = np.arange(LANES)
    col = lane % Fp
    is_comp = col == COMP_COL
    is_out = col == OUT_COL
    thresh = np.where(is_comp, COMP_THRESH,
                      np.where(is_out, OUT_THRESH, 0.0)).astype(np.float32)[None, :]
    penw = np.where(is_comp | is_out, BETA / float(B),
                    0.0).astype(np.float32)[None, :]

    mse_w = float(ALPHA) / float(B * F)
    kernel = functools.partial(_spectral_loss_kernel, mse_w=mse_w)

    n_elems = rows_pad * LANES
    itemsize = jnp.dtype(pred2.dtype).itemsize
    cost = pl.CostEstimate(
        flops=6 * n_elems,
        transcendentals=0,
        bytes_accessed=2 * n_elems * itemsize + n_splits * 8 * LANES * 4,
    )

    partials = pl.pallas_call(
        kernel,
        out_shape=jax.ShapeDtypeStruct((n_splits, 8, LANES), jnp.float32),
        grid_spec=pltpu.PrefetchScalarGridSpec(
            num_scalar_prefetch=0,
            grid=(n_splits, tiles_per_split),
            in_specs=[
                # (1,128) per-lane constants, resident across the whole grid.
                pl.BlockSpec((1, LANES), lambda s, t: (0, 0)),
                pl.BlockSpec((1, LANES), lambda s, t: (0, 0)),
                # streamed, double-buffered data tiles
                pl.BlockSpec((tr, LANES),
                             lambda s, t: (s * tiles_per_split + t, 0)),
                pl.BlockSpec((tr, LANES),
                             lambda s, t: (s * tiles_per_split + t, 0)),
            ],
            out_specs=pl.BlockSpec((1, 8, LANES), lambda s, t: (s, 0, 0)),
            scratch_shapes=[pltpu.VMEM((8, LANES), jnp.float32)],
        ),
        compiler_params=pltpu.CompilerParams(
            dimension_semantics=("parallel", "arbitrary")),
        cost_estimate=cost,
    )(jnp.asarray(thresh), jnp.asarray(penw), pred2, targ2)

    # Tiny final combine of the per-split / per-lane partials.
    return jnp.sum(partials)


def spectral_loss_ref(predicted, target):
    """Pure-JAX reference matching the PyTorch module exactly."""
    mse = jnp.mean((predicted - target) ** 2)
    comp = jnp.mean(jnp.maximum(predicted[:, COMP_COL] - COMP_THRESH, 0.0) ** 2)
    outp = jnp.mean(jnp.maximum(predicted[:, OUT_COL] - OUT_THRESH, 0.0) ** 2)
    return ALPHA * mse + BETA * (comp + outp)


if __name__ == "__main__":
    key = jax.random.PRNGKey(0)
    k1, k2, k3, k4 = jax.random.split(key, 4)

    # Case 1: small batch of mixing-parameter vectors (single tile, one split).
    B, F = 8, 16
    predicted = jax.random.uniform(k1, (B, F), dtype=jnp.float32) * 1.2
    target = jax.random.uniform(k2, (B, F), dtype=jnp.float32)
    loss = spectral_loss(predicted, target)
    jax.block_until_ready(loss)
    ref = spectral_loss_ref(predicted, target)
    assert jnp.allclose(loss, ref, rtol=1e-5, atol=1e-6), (loss, ref)

    # Case 2: exercises feature padding (F=10 -> 16), batch padding, the
    # multi-tile reduction axis and the 2-way split (still tiny overall).
    B2, F2 = 200, 10
    predicted2 = jax.random.uniform(k3, (B2, F2), dtype=jnp.float32) * 1.2
    target2 = jax.random.uniform(k4, (B2, F2), dtype=jnp.float32)
    loss2 = spectral_loss(predicted2, target2, tile_rows=8)
    jax.block_until_ready(loss2)
    ref2 = spectral_loss_ref(predicted2, target2)
    assert jnp.allclose(loss2, ref2, rtol=1e-5, atol=1e-6), (loss2, ref2)

    print("KERNEL_OK")
</pallas_src>

<mosaic_0001>
module attributes {stable_mosaic.version = 11 : i64} {
  func.func @_spectral_loss_kernel(%arg0: i32, %arg1: i32, %arg2: memref<1x128xf32, #tpu.memory_space<vmem>>, %arg3: memref<1x128xf32, #tpu.memory_space<vmem>>, %arg4: memref<8x128xf32, #tpu.memory_space<vmem>>, %arg5: memref<8x128xf32, #tpu.memory_space<vmem>>, %arg6: memref<1x8x128xf32, #tpu.memory_space<vmem>>, %arg7: memref<8x128xf32, #tpu.memory_space<vmem>>) attributes {dimension_semantics = [#tpu.dimension_semantics<parallel>, #tpu.dimension_semantics<arbitrary>], iteration_bounds = array<i64: 1, 1>, scalar_prefetch = 0 : i64, scratch_operands = 1 : i64, tpu.core_type = #tpu.core_type<tc>, window_params = [{pipeline_mode = #tpu.pipeline_mode<synchronous>, transform_indices = @transform_0, window_bounds = array<i64: 1, 128>}, {pipeline_mode = #tpu.pipeline_mode<synchronous>, transform_indices = @transform_1, window_bounds = array<i64: 1, 128>}, {transform_indices = @transform_2, window_bounds = array<i64: 8, 128>}, {transform_indices = @transform_3, window_bounds = array<i64: 8, 128>}, {transform_indices = @transform_4, window_bounds = array<i64: 1, 8, 128>}]} {
    %c0_i32 = arith.constant 0 : i32
    %0 = arith.cmpi eq, %arg1, %c0_i32 : i32
    %1 = arith.extui %0 : i1 to i32
    %c0_i32_0 = arith.constant 0 : i32
    %2 = arith.cmpi ne, %1, %c0_i32_0 : i32
    scf.if %2 {
      %cst_16 = arith.constant 0.000000e+00 : f32
      %27 = vector.broadcast %cst_16 : f32 to vector<8x128xf32>
      %c0_17 = arith.constant 0 : index
      %c0_18 = arith.constant 0 : index
      %28 = vector.load %arg7[%c0_17, %c0_18] : memref<8x128xf32, #tpu.memory_space<vmem>>, vector<8x128xf32>
      tpu.vector_store %arg7[%c0_17, %c0_18], %27 {strides = array<i32>} : memref<8x128xf32, #tpu.memory_space<vmem>>, vector<8x128xf32>,
    } else {
    }
    %c0 = arith.constant 0 : index
    %c0_1 = arith.constant 0 : index
    %3 = vector.load %arg4[%c0, %c0_1] : memref<8x128xf32, #tpu.memory_space<vmem>>, vector<8x128xf32>
    %c0_2 = arith.constant 0 : index
    %c0_3 = arith.constant 0 : index
    %4 = vector.load %arg5[%c0_2, %c0_3] : memref<8x128xf32, #tpu.memory_space<vmem>>, vector<8x128xf32>
    %5 = arith.subf %3, %4 : vector<8x128xf32>
    %c0_4 = arith.constant 0 : index
    %c0_5 = arith.constant 0 : index
    %6 = vector.load %arg2[%c0_4, %c0_5] : memref<1x128xf32, #tpu.memory_space<vmem>>, vector<1x128xf32>
    %7 = vector.broadcast %6 : vector<1x128xf32> to vector<8x128xf32>
    %8 = arith.subf %3, %7 : vector<8x128xf32>
    %cst = arith.constant 0.000000e+00 : f32
    %9 = vector.broadcast %cst : f32 to vector<8x128xf32>
    %10 = arith.maximumf %8, %9 : vector<8x128xf32>
    %11 = arith.mulf %5, %5 : vector<8x128xf32>
    %cst_6 = arith.constant 6.250000e-03 : f32
    %12 = vector.broadcast %cst_6 : f32 to vector<8x128xf32>
    %13 = arith.mulf %12, %11 : vector<8x128xf32>
    %c0_7 = arith.constant 0 : index
    %c0_8 = arith.constant 0 : index
    %14 = vector.load %arg3[%c0_7, %c0_8] : memref<1x128xf32, #tpu.memory_space<vmem>>, vector<1x128xf32>
    %15 = arith.mulf %10, %10 : vector<8x128xf32>
    %16 = vector.broadcast %14 : vector<1x128xf32> to vector<8x128xf32>
    %17 = arith.mulf %16, %15 : vector<8x128xf32>
    %18 = arith.addf %13, %17 : vector<8x128xf32>
    %c0_9 = arith.constant 0 : index
    %c0_10 = arith.constant 0 : index
    %19 = vector.load %arg7[%c0_9, %c0_10] : memref<8x128xf32, #tpu.memory_space<vmem>>, vector<1x128xf32>
    %cst_11 = arith.constant dense<0.000000e+00> : vector<128xf32>
    %20 = vector.multi_reduction <add>, %18, %cst_11 [0] : vector<8x128xf32> to vector<128xf32>
    %21 = vector.shape_cast %20 : vector<128xf32> to vector<1x128xf32>
    %22 = arith.addf %19, %21 : vector<1x128xf32>
    %c0_12 = arith.constant 0 : index
    %c0_13 = arith.constant 0 : index
    %23 = vector.load %arg7[%c0_12, %c0_13] : memref<8x128xf32, #tpu.memory_space<vmem>>, vector<1x128xf32>
    tpu.vector_store %arg7[%c0_12, %c0_13], %22 {strides = array<i32>} : memref<8x128xf32, #tpu.memory_space<vmem>>, vector<1x128xf32>,
    %c0_i32_14 = arith.constant 0 : i32
    %24 = arith.cmpi eq, %arg1, %c0_i32_14 : i32
    %25 = arith.extui %24 : i1 to i32
    %c0_i32_15 = arith.constant 0 : i32
    %26 = arith.cmpi ne, %25, %c0_i32_15 : i32
    scf.if %26 {
      %c0_16 = arith.constant 0 : index
      %c0_17 = arith.constant 0 : index
      %27 = vector.load %arg7[%c0_16, %c0_17] : memref<8x128xf32, #tpu.memory_space<vmem>>, vector<8x128xf32>
      %c0_18 = arith.constant 0 : index
      %c0_19 = arith.constant 0 : index
      %c0_20 = arith.constant 0 : index
      %28 = vector.load %arg6[%c0_18, %c0_19, %c0_20] : memref<1x8x128xf32, #tpu.memory_space<vmem>>, vector<1x8x128xf32>
      %29 = vector.shape_cast %28 : vector<1x8x128xf32> to vector<8x128xf32>
      %30 = vector.shape_cast %27 : vector<8x128xf32> to vector<1x8x128xf32>
      tpu.vector_store %arg6[%c0_18, %c0_19, %c0_20], %30 {strides = array<i32>} : memref<1x8x128xf32, #tpu.memory_space<vmem>>, vector<1x8x128xf32>,
    } else {
    }
    return
  }
  func.func @transform_0(%arg0: i32, %arg1: i32) -> (i32, i32) {
    %c0_i32 = arith.constant 0 : i32
    %c0_i32_0 = arith.constant 0 : i32
    %c0_i32_1 = arith.constant 0 : i32
    return %c0_i32, %c0_i32_0 : i32, i32
  }
  func.func @transform_1(%arg0: i32, %arg1: i32) -> (i32, i32) {
    %c0_i32 = arith.constant 0 : i32
    %c0_i32_0 = arith.constant 0 : i32
    %c0_i32_1 = arith.constant 0 : i32
    return %c0_i32, %c0_i32_0 : i32, i32
  }
  func.func @transform_2(%arg0: i32, %arg1: i32) -> (i32, i32) {
    %c1_i32 = arith.constant 1 : i32
    %0 = arith.muli %arg0, %c1_i32 : i32
    %1 = arith.addi %0, %arg1 : i32
    %c0_i32 = arith.constant 0 : i32
    %c0_i32_0 = arith.constant 0 : i32
    return %1, %c0_i32 : i32, i32
  }
  func.func @transform_3(%arg0: i32, %arg1: i32) -> (i32, i32) {
    %c1_i32 = arith.constant 1 : i32
    %0 = arith.muli %arg0, %c1_i32 : i32
    %1 = arith.addi %0, %arg1 : i32
    %c0_i32 = arith.constant 0 : i32
    %c0_i32_0 = arith.constant 0 : i32
    return %1, %c0_i32 : i32, i32
  }
  func.func @transform_4(%arg0: i32, %arg1: i32) -> (i32, i32, i32) {
    %c0_i32 = arith.constant 0 : i32
    %c0_i32_0 = arith.constant 0 : i32
    %c0_i32_1 = arith.constant 0 : i32
    return %arg0, %c0_i32, %c0_i32_0 : i32, i32, i32
  }
}

</mosaic_0001>

<bundles_post_ra>
// kernel: tpu_custom_call.1
= control target key start
LH: loop header
LB: loop body
LE: loop exit
PB: predicated region body
PF: predicated region fallthrough
CT: control target
= control target key end

     0   :  { %9 = vsyncpa [#allocation4], 0  ;;  %s277_s0 = inlined_call_operand.hbm [shape: f32[1,128], index: 0, kind: input, shape index: {}]   ;;  %s278_s1 = inlined_call_operand.vmem [shape: f32[1,128], index: 1, kind: input, shape index: {}]   ;;  %s279_s2 = inlined_call_operand.hbm [shape: f32[8,128], index: 2, kind: input, shape index: {}]   ;;  %s280_s3 = inlined_call_operand.vmem [shape: f32[8,128], index: 3, kind: input, shape index: {}]   ;;  %s281_s4 = inlined_call_operand.hbm [shape: f32[1,8,128], index: 4, kind: output, shape index: {}]  }
   0x1   :  { %10 = vsyncpa [#allocation7], 0 }
   0x2   :  { %11 = vsyncpa [#allocation5], 0  ;;  %s206_s15 = smov [#allocation3]   ;;  %s207_s17 = smov [#allocation6]  }
   0x3   :  { %s18_s16 = sshll.u32 %s206_s15, 4  ;;  %s33_s18 = sshll.u32 %s207_s17, 4  ;;  %s19_s16 = int_to_ptr.vmem [resolvable:$true] %s18_s16  ;;  %s34_s18 = int_to_ptr.vmem [resolvable:$true] %s33_s18 }
   0x4   :  { %s134_s21 = scalar_lea.hbm %s277_s0, 16 }
   0x5   :  { %p135_p0 = scmp.ne.s32.totalorder %s277_s0, %s134_s21  ;;  %p138_p1 = scmp.lt.u32.totalorder %s134_s21, %s277_s0 }
   0x7   :  { %p140_p2 = pnand %p138_p1, %p135_p0 }
   0x9   :  { %143 = shalt.err (!%p140_p2)
}
   0xa   :  { %s144_s26 = scalar_lea.vmem %s19_s16, 16  ;;  %s148_s27 = scalar_lea.vmem %s19_s16, 32 }
   0xb   :  { %p145_p3 = scmp.ne.s32.totalorder %s19_s16, %s144_s26  ;;  %p149_p4 = scmp.lt.s32.totalorder %s19_s16, %s19_s16 }
   0xc   :  { %p150_p5 = scmp.lt.s32.totalorder %s148_s27, %s144_s26 }
   0xe   :  { %p151_p6 = por %p150_p5, %p149_p4 }
  0x10   :  { %p152_p7 = pnand %p151_p6, %p145_p3 }
  0x12   :  { %155 = shalt.err (!%p152_p7)
}
  0x13   :  { %21 = dma.hbm_to_vmem [thread:$0]  %s277_s0, 16, %s19_s16, [#allocation4]  }
  0x14   :  { %s156_s6 = scalar_lea.hbm %s279_s2, 128 }
  0x15   :  { %p157_p8 = scmp.ne.s32.totalorder %s279_s2, %s156_s6  ;;  %p160_p9 = scmp.lt.u32.totalorder %s156_s6, %s279_s2 }
  0x17   :  { %p162_p10 = pnand %p160_p9, %p157_p8 }
  0x19   :  { %165 = shalt.err (!%p162_p10)
}
  0x1a   :  { %s166_s11 = scalar_lea.vmem %s34_s18, 128  ;;  %p171_p12 = scmp.lt.s32.totalorder %s34_s18, %s34_s18 }
  0x1b   :  { %p167_p11 = scmp.ne.s32.totalorder %s34_s18, %s166_s11  ;;  %p172_p13 = scmp.lt.s32.totalorder %s166_s11, %s166_s11 }
  0x1d   :  { %p173_p0 = por %p172_p13, %p171_p12 }
  0x1f   :  { %p174_p1 = pnand %p173_p0, %p167_p11 }
  0x21   :  { %177 = shalt.err (!%p174_p1)
}
  0x22   :  { %36 = dma.hbm_to_vmem [thread:$0]  %s279_s2, 128, %s34_s18, [#allocation7]  }
  0x23   :  { %200 = dma.done.wait [#allocation4], 16  }
  0x24   :  { %201 = vsyncadd [#allocation4], 4294967280 }
  0x25   :  { %202 = dma.done.wait [#allocation7], 128  }
  0x26   :  { %203 = vsyncadd [#allocation7], 4294967168  ;;  %v208_v0 = vmov 0.0   ;;  %v68_v1 = vld [vmem:[#allocation6] sm:$0xff]  ;;  %v69_v2 = vld [vmem:[%s280_s3] sm:$0xff]  ;;  %s209_s2 = smov [#allocation8]  }
  0x27   :  { %67 = vst [vmem:[#allocation2] sm:$0xff] %v208_v0  ;;  %v128_v3 = vld [vmem:[#allocation3] ss:$0 sm:$0xff]  ;;  %v70_v4 = vsub.f32 %v68_v1, %v69_v2  ;;  %v129_v8 = vld [vmem:[%s278_s1] ss:$0 sm:$0xff]  ;;  %s112_s3 = sshll.u32 %s209_s2, 4  ;;  %s113_s3 = int_to_ptr.vmem [resolvable:$true] %s112_s3 }
  0x28   :  { %v78_v5 = vsub.f32 %v68_v1, %v128_v3  ;;  %s178_s17 = scalar_lea.vmem %s113_s3, 128  ;;  %p183_p3 = scmp.lt.s32.totalorder %s113_s3, %s113_s3 }
  0x29   :  { %v80_v7 = vmul.f32 %v70_v4, %v70_v4  ;;  %p179_p2 = scmp.ne.s32.totalorder %s113_s3, %s178_s17  ;;  %p184_p4 = scmp.lt.s32.totalorder %s178_s17, %s178_s17 }
  0x2a   :  { %v79_v6 = vmax.f32 %v78_v5, 0.0 }
  0x2b   :  { %v81_v9 = vmul.f32 0.00625, %v80_v7  ;;  %p185_p5 = por %p184_p4, %p183_p3 }
  0x2c   :  { %v83_v10 = vmul.f32 %v79_v6, %v79_v6 }
  0x2d   :  { %p186_p6 = pnand %p185_p5, %p179_p2 }
  0x2e   :  { %v90_v11 = vmul.f32 %v129_v8, %v83_v10  ;;  %v92_v18 = vld [vmem:[#allocation2] sm:$0x1] }
  0x30   :  { %v91_v12 = vadd.f32 %v90_v11, %v81_v9 }
  0x32   :  { %v93_v13 = vrot.slane %v91_v12, 4 }
  0x34   :  { %v94_v14 = vadd.f32 %v93_v13, %v91_v12 }
  0x36   :  { %v95_v15 = vrot.slane %v94_v14, 2 }
  0x38   :  { %v96_v16 = vadd.f32 %v95_v15, %v94_v14 }
  0x3a   :  { %v97_v17 = vrot.slane %v96_v16, 1 }
  0x3c   :  { %v98_v19 = vadd.f32 %v97_v17, %v96_v16 }
  0x3e   :  { %v99_v20 = vadd.f32 %v98_v19, %v92_v18 }
  0x40   :  { %100 = vst [vmem:[#allocation2] sm:$0x1] %v99_v20 }
  0x47   :  { %v104_v21 = vld [vmem:[#allocation2] sm:$0xff] }
  0x48   :  { %105 = vst [vmem:[#allocation8] sm:$0xff] %v104_v21 }
  0x49   :  { %189 = shalt.err (!%p186_p6)
}
  0x4a   :  { %s190_s19 = scalar_lea.hbm %s281_s4, 128 }
  0x4b   :  { %p191_p7 = scmp.ne.s32.totalorder %s281_s4, %s190_s19  ;;  %p194_p8 = scmp.lt.u32.totalorder %s190_s19, %s281_s4 }
  0x4d   :  { %p196_p9 = pnand %p194_p8, %p191_p7 }
  0x4f   :  { %199 = shalt.err (!%p196_p9)
}
  0x50   :  { %115 = dma.vmem_to_hbm [thread:$0]  %s113_s3, 128, %s281_s4, [#allocation5]  }
  0x51   :  { %204 = dma.done.wait [#allocation5], 128  }
  0x52   :  { %205 = vsyncadd [#allocation5], 4294967168 }
  0x53   :  { %119 = vsyncpa [#allocation4], 1 }
  0x54   :  { %120 = vsyncpa [#allocation7], 1 }
  0x55   :  { %121 = vsyncpa [#allocation5], 1 }

</bundles_post_ra>
